<compile_context>
chip_gen: v5e
topology: v5e:2x2
jax: 0.10.0
libtpu: 0.0.40
codegen_flags: <defaults>
</compile_context>

<pallas_src>
import math
import functools

import jax
import jax.numpy as jnp
from jax.experimental import pallas as pl
from jax.experimental.pallas import tpu as pltpu

LANE = 128       # TPU lane width (last-dim tile)
SUBLANE = 8      # TPU sublane width (second-last-dim tile, f32)
SMALL_BATCH = 512  # below this: single grid point (latency path)


def _round_up(x, m):
    return ((x + m - 1) // m) * m


def _cdiv(a, b):
    return -(-a // b)


def _pad2(a, rows, cols):
    r, c = a.shape
    return jnp.pad(a, ((0, rows - r), (0, cols - c)))


# ----------------------------------------------------------------------------
# Pallas kernel: whole MLP forward for one batch tile.
#   out = tanh(tanh(x @ W0 + b0) @ W1 + b1) @ Wo + bo
# Dots run on the MXU with bf16 operands and f32 accumulation; tanh runs on
# the EUP in f32 (v5e has no bf16 VPU/EUP path).  Hidden dims are pre-padded
# to 128 lanes; the input and output dims stay at their true (full-array)
# widths so x reads and out writes carry no padding bytes.
# ----------------------------------------------------------------------------
def mlp_kernel(x_ref, w0_ref, w1_ref, wo_ref, b01_ref, bo_ref, out_ref):
    x = x_ref[...].astype(jnp.bfloat16)           # (bt, input_dim)
    b = b01_ref[...]                              # (2, d_h) f32
    b0 = b[0:1, :]
    b1 = b[1:2, :]

    h = jnp.tanh(
        jnp.dot(x, w0_ref[...], preferred_element_type=jnp.float32) + b0)
    h = jnp.tanh(
        jnp.dot(h.astype(jnp.bfloat16), w1_ref[...],
                preferred_element_type=jnp.float32) + b1)
    o = jnp.dot(h.astype(jnp.bfloat16), wo_ref[...],
                preferred_element_type=jnp.float32) + bo_ref[...]
    out_ref[...] = o.astype(out_ref.dtype)        # (bt, out_dim), full-dim store


# ----------------------------------------------------------------------------
# One-time parameter preparation (do NOT call per forward).
# Pads both hidden dims to a common 128-multiple, casts weights to bf16 for
# the MXU, stacks the two hidden-layer biases into one operand.
# Zero padding is exact: padded lanes are tanh(0)=0 and hit zero weight rows.
# ----------------------------------------------------------------------------
def prepare_params(params):
    w0, b0 = params["w0"], params["b0"]
    w1, b1 = params["w1"], params["b1"]
    wo, bo = params["wo"], params["bo"]

    input_dim, h0 = w0.shape
    h1 = w1.shape[1]
    out_dim = wo.shape[1]
    d_h = _round_up(max(h0, h1, LANE), LANE)      # common padded hidden width

    return {
        "w0": _pad2(w0, input_dim, d_h).astype(jnp.bfloat16),   # (in, d_h)
        "w1": _pad2(w1, d_h, d_h).astype(jnp.bfloat16),         # (d_h, d_h)
        "wo": _pad2(wo, d_h, out_dim).astype(jnp.bfloat16),     # (d_h, out)
        "b01": jnp.concatenate(
            [_pad2(b0, 1, d_h), _pad2(b1, 1, d_h)], axis=0),    # (2, d_h) f32
        "bo": bo,                                               # (1, out) f32
    }


@functools.partial(jax.jit, static_argnames=("batch_tile",))
def r_network_forward(x, pp, *, batch_tile=2048):
    """R_network forward. `pp` is the pre-padded pytree from prepare_params."""
    batch, input_dim = x.shape
    w0_p, w1_p, wo_p = pp["w0"], pp["w1"], pp["wo"]
    b01, bo = pp["b01"], pp["bo"]
    d_h = w1_p.shape[0]
    out_dim = wo_p.shape[1]

    # Batch tiling: single grid point for small batches (no per-step pipeline
    # overhead); otherwise large tiles, but at least 2 grid steps so the
    # "parallel" axis can shard across v7x's two TensorCores.
    if batch <= SMALL_BATCH:
        bt = _round_up(batch, SUBLANE)
    else:
        bt = min(_round_up(batch_tile, SUBLANE),
                 _round_up(_cdiv(batch, 2), SUBLANE))
    batch_p = _round_up(batch, bt)
    grid = (batch_p // bt,)

    # Only touch x if the batch needs row padding (never pad the feature dim).
    x_in = x if batch_p == batch else jnp.pad(x, ((0, batch_p - batch), (0, 0)))

    def const2(shape):
        # Constant block index -> stays resident in VMEM, not re-DMA'd per step.
        return pl.BlockSpec(shape, lambda i: (0, 0))

    out = pl.pallas_call(
        mlp_kernel,
        out_shape=jax.ShapeDtypeStruct((batch_p, out_dim), x.dtype),
        grid_spec=pl.GridSpec(
            grid=grid,
            in_specs=[
                pl.BlockSpec((bt, input_dim), lambda i: (i, 0)),  # x tile (unpadded lanes)
                const2((input_dim, d_h)),                         # w0 bf16
                const2((d_h, d_h)),                               # w1 bf16
                const2((d_h, out_dim)),                           # wo bf16
                const2((2, d_h)),                                 # b0,b1 f32
                const2((1, out_dim)),                             # bo f32
            ],
            out_specs=pl.BlockSpec((bt, out_dim), lambda i: (i, 0)),
        ),
        compiler_params=pltpu.CompilerParams(
            # Batch axis is independent -> shards across v7x's 2 TensorCores.
            dimension_semantics=("parallel",),
        ),
    )(x_in, w0_p, w1_p, wo_p, b01, bo)

    return out if batch_p == batch else out[:batch]


# ----------------------------------------------------------------------------
# Deterministic parameter init mimicking nn.Linear default
# (uniform(-1/sqrt(fan_in), 1/sqrt(fan_in)) for both weight and bias).
# ----------------------------------------------------------------------------
def init_params(key, input_dim, hidden_layers, output_dim):
    dims = [input_dim] + list(hidden_layers) + [output_dim]
    names = ["0", "1", "o"]  # input layer, one hidden layer, output layer
    params = {}
    for n, (din, dout) in zip(names, zip(dims[:-1], dims[1:])):
        key, kw, kb = jax.random.split(key, 3)
        bound = 1.0 / math.sqrt(din)
        params[f"w{n}"] = jax.random.uniform(
            kw, (din, dout), jnp.float32, minval=-bound, maxval=bound
        )
        params[f"b{n}"] = jax.random.uniform(
            kb, (1, dout), jnp.float32, minval=-bound, maxval=bound
        )
    return params


def r_network_ref(x, p):
    h = jnp.tanh(x @ p["w0"] + p["b0"])
    h = jnp.tanh(h @ p["w1"] + p["b1"])
    return h @ p["wo"] + p["bo"]


if __name__ == "__main__":
    # R_network(input_dim=16, output_dim=4, hidden_layers=[32, 32], activation=tanh)
    input_dim, output_dim = 16, 4
    hidden_layers = [32, 32]
    batch = 32

    key = jax.random.PRNGKey(0)
    key, kx = jax.random.split(key)
    x = jax.random.normal(kx, (batch, input_dim), jnp.float32)
    params = init_params(key, input_dim, hidden_layers, output_dim)

    # Pad / cast the params exactly once, outside the forward.
    pparams = prepare_params(params)

    out = r_network_forward(x, pparams)
    out = jax.block_until_ready(out)

    ref = r_network_ref(x, params)
    assert out.shape == (batch, output_dim)
    # bf16 MXU operands (f32 accumulation) -> slightly looser tolerance than
    # the pure-f32 reference.
    assert jnp.allclose(out, ref, atol=3e-2, rtol=3e-2), "mismatch vs reference"

    print("KERNEL_OK")
</pallas_src>

<mosaic_0001>
module attributes {stable_mosaic.version = 11 : i64} {
  func.func @mlp_kernel(%arg0: i32, %arg1: memref<32x16xf32, #tpu.memory_space<vmem>>, %arg2: memref<16x128xbf16, #tpu.memory_space<vmem>>, %arg3: memref<128x128xbf16, #tpu.memory_space<vmem>>, %arg4: memref<128x4xbf16, #tpu.memory_space<vmem>>, %arg5: memref<2x128xf32, #tpu.memory_space<vmem>>, %arg6: memref<1x4xf32, #tpu.memory_space<vmem>>, %arg7: memref<32x4xf32, #tpu.memory_space<vmem>>) attributes {dimension_semantics = [#tpu.dimension_semantics<parallel>], iteration_bounds = array<i64: 1>, scalar_prefetch = 0 : i64, scratch_operands = 0 : i64, tpu.core_type = #tpu.core_type<tc>, window_params = [{transform_indices = @transform_0, window_bounds = array<i64: 32, 16>}, {pipeline_mode = #tpu.pipeline_mode<synchronous>, transform_indices = @transform_1, window_bounds = array<i64: 16, 128>}, {pipeline_mode = #tpu.pipeline_mode<synchronous>, transform_indices = @transform_2, window_bounds = array<i64: 128, 128>}, {pipeline_mode = #tpu.pipeline_mode<synchronous>, transform_indices = @transform_3, window_bounds = array<i64: 128, 4>}, {pipeline_mode = #tpu.pipeline_mode<synchronous>, transform_indices = @transform_4, window_bounds = array<i64: 2, 128>}, {pipeline_mode = #tpu.pipeline_mode<synchronous>, transform_indices = @transform_5, window_bounds = array<i64: 1, 4>}, {transform_indices = @transform_6, window_bounds = array<i64: 32, 4>}]} {
    %c0 = arith.constant 0 : index
    %c0_0 = arith.constant 0 : index
    %0 = vector.load %arg1[%c0, %c0_0] : memref<32x16xf32, #tpu.memory_space<vmem>>, vector<32x16xf32>
    %1 = arith.truncf %0 : vector<32x16xf32> to vector<32x16xbf16>
    %c0_1 = arith.constant 0 : index
    %c0_2 = arith.constant 0 : index
    %2 = vector.load %arg5[%c0_1, %c0_2] : memref<2x128xf32, #tpu.memory_space<vmem>>, vector<2x128xf32>
    %3 = vector.extract_strided_slice %2 {offsets = [0, 0], sizes = [1, 128], strides = [1, 1]} : vector<2x128xf32> to vector<1x128xf32>
    %4 = vector.extract_strided_slice %2 {offsets = [1, 0], sizes = [1, 128], strides = [1, 1]} : vector<2x128xf32> to vector<1x128xf32>
    %c0_3 = arith.constant 0 : index
    %c0_4 = arith.constant 0 : index
    %5 = vector.load %arg2[%c0_3, %c0_4] : memref<16x128xbf16, #tpu.memory_space<vmem>>, vector<16x128xbf16>
    %cst = arith.constant dense<0.000000e+00> : vector<32x128xf32>
    %6 = tpu.matmul %1, %5, %cst {dimension_numbers = #tpu.dot_dimension_numbers<[1], [0], [0], [1], [0, 0, 1, 1], [], []>} : vector<32x16xbf16>, vector<16x128xbf16>, vector<32x128xf32> -> vector<32x128xf32>
    %7 = vector.broadcast %3 : vector<1x128xf32> to vector<32x128xf32>
    %8 = arith.addf %6, %7 : vector<32x128xf32>
    %9 = math.tanh %8 : vector<32x128xf32>
    %10 = arith.truncf %9 : vector<32x128xf32> to vector<32x128xbf16>
    %c0_5 = arith.constant 0 : index
    %c0_6 = arith.constant 0 : index
    %11 = vector.load %arg3[%c0_5, %c0_6] : memref<128x128xbf16, #tpu.memory_space<vmem>>, vector<128x128xbf16>
    %cst_7 = arith.constant dense<0.000000e+00> : vector<32x128xf32>
    %12 = tpu.matmul %10, %11, %cst_7 {dimension_numbers = #tpu.dot_dimension_numbers<[1], [0], [0], [1], [0, 0, 1, 1], [], []>} : vector<32x128xbf16>, vector<128x128xbf16>, vector<32x128xf32> -> vector<32x128xf32>
    %13 = vector.broadcast %4 : vector<1x128xf32> to vector<32x128xf32>
    %14 = arith.addf %12, %13 : vector<32x128xf32>
    %15 = math.tanh %14 : vector<32x128xf32>
    %16 = arith.truncf %15 : vector<32x128xf32> to vector<32x128xbf16>
    %c0_8 = arith.constant 0 : index
    %c0_9 = arith.constant 0 : index
    %17 = vector.load %arg4[%c0_8, %c0_9] : memref<128x4xbf16, #tpu.memory_space<vmem>>, vector<128x4xbf16>
    %cst_10 = arith.constant dense<0.000000e+00> : vector<32x4xf32>
    %18 = tpu.matmul %16, %17, %cst_10 {dimension_numbers = #tpu.dot_dimension_numbers<[1], [0], [0], [1], [0, 0, 1, 1], [], []>} : vector<32x128xbf16>, vector<128x4xbf16>, vector<32x4xf32> -> vector<32x4xf32>
    %c0_11 = arith.constant 0 : index
    %c0_12 = arith.constant 0 : index
    %19 = vector.load %arg6[%c0_11, %c0_12] : memref<1x4xf32, #tpu.memory_space<vmem>>, vector<1x4xf32>
    %20 = vector.broadcast %19 : vector<1x4xf32> to vector<32x4xf32>
    %21 = arith.addf %18, %20 : vector<32x4xf32>
    %c0_13 = arith.constant 0 : index
    %c0_14 = arith.constant 0 : index
    %22 = vector.load %arg7[%c0_13, %c0_14] : memref<32x4xf32, #tpu.memory_space<vmem>>, vector<32x4xf32>
    tpu.vector_store %arg7[%c0_13, %c0_14], %21 {strides = array<i32>} : memref<32x4xf32, #tpu.memory_space<vmem>>, vector<32x4xf32>,
    return
  }
  func.func @transform_0(%arg0: i32) -> (i32, i32) {
    %c0_i32 = arith.constant 0 : i32
    %c0_i32_0 = arith.constant 0 : i32
    return %arg0, %c0_i32 : i32, i32
  }
  func.func @transform_1(%arg0: i32) -> (i32, i32) {
    %c0_i32 = arith.constant 0 : i32
    %c0_i32_0 = arith.constant 0 : i32
    %c0_i32_1 = arith.constant 0 : i32
    return %c0_i32, %c0_i32_0 : i32, i32
  }
  func.func @transform_2(%arg0: i32) -> (i32, i32) {
    %c0_i32 = arith.constant 0 : i32
    %c0_i32_0 = arith.constant 0 : i32
    %c0_i32_1 = arith.constant 0 : i32
    return %c0_i32, %c0_i32_0 : i32, i32
  }
  func.func @transform_3(%arg0: i32) -> (i32, i32) {
    %c0_i32 = arith.constant 0 : i32
    %c0_i32_0 = arith.constant 0 : i32
    %c0_i32_1 = arith.constant 0 : i32
    return %c0_i32, %c0_i32_0 : i32, i32
  }
  func.func @transform_4(%arg0: i32) -> (i32, i32) {
    %c0_i32 = arith.constant 0 : i32
    %c0_i32_0 = arith.constant 0 : i32
    %c0_i32_1 = arith.constant 0 : i32
    return %c0_i32, %c0_i32_0 : i32, i32
  }
  func.func @transform_5(%arg0: i32) -> (i32, i32) {
    %c0_i32 = arith.constant 0 : i32
    %c0_i32_0 = arith.constant 0 : i32
    %c0_i32_1 = arith.constant 0 : i32
    return %c0_i32, %c0_i32_0 : i32, i32
  }
  func.func @transform_6(%arg0: i32) -> (i32, i32) {
    %c0_i32 = arith.constant 0 : i32
    %c0_i32_0 = arith.constant 0 : i32
    return %arg0, %c0_i32 : i32, i32
  }
}

</mosaic_0001>

<bundles_post_ra>
// kernel: r_network_forward.1
= control target key start
LH: loop header
LB: loop body
LE: loop exit
PB: predicated region body
PF: predicated region fallthrough
CT: control target
= control target key end

     0   :  { %vm40_vm0 = vcmask 130048   ;;  %vm249_vm1 = vcmask 31744   ;;  %s494_s1 = inlined_call_operand.vmem [shape: bf16[16,128], index: 1, kind: input, shape index: {}]   ;;  %s495_s0 = inlined_call_operand.vmem [shape: f32[32,16], index: 0, kind: input, shape index: {}]   ;;  %s496_s2 = inlined_call_operand.vmem [shape: bf16[128,128], index: 2, kind: input, shape index: {}]   ;;  %s497_s4 = inlined_call_operand.vmem [shape: f32[2,128], index: 4, kind: input, shape index: {}]   ;;  %s498_s3 = inlined_call_operand.vmem [shape: bf16[128,4], index: 3, kind: input, shape index: {}]   ;;  %s499_s5 = inlined_call_operand.vmem [shape: f32[1,4], index: 5, kind: input, shape index: {}]   ;;  %s500_s6 = inlined_call_operand.vmem [shape: f32[32,4], index: 6, kind: output, shape index: {}]  }
   0x1   :  { %v328_v0 = vld [vmem:[%s494_s1] sm:$0xff]  ;;  %v25_v2 = vld [vmem:[%s495_s0 + $0x8] sm:$0xff]  ;;  %v336_v4 = vld [vmem:[%s496_s2 + $0x38] sm:$0xff] }
   0x2   :  { %v24_v1 = vld [vmem:[%s495_s0] sm:$0xff]  ;;  %54 = vmatpush.bf16.msra.mxu0 %v328_v0  ;;  %137 = vmatpush.bf16.msra.mxu1 %v336_v4  ;;  %v335_v5 = vld [vmem:[%s496_s2 + $0x30] sm:$0xff]  ;;  %v334_v6 = vld [vmem:[%s496_s2 + $0x28] sm:$0xff] }
   0x3   :  { %v28_v3 = vpack.c.bf16 %v25_v2, %v24_v1  ;;  %345 = vmatpush.bf16.msra.mxu3 %v336_v4  ;;  %v26_v7 = vld [vmem:[%s495_s0 + $0x10] sm:$0xff]  ;;  %v27_v8 = vld [vmem:[%s495_s0 + $0x18] sm:$0xff]  ;;  %v333_v10 = vld [vmem:[%s496_s2 + $0x20] sm:$0xff] }
   0x4   :  { %v29_v9 = vpack.c.bf16 %v27_v8, %v26_v7  ;;  %v332_v11 = vld [vmem:[%s496_s2 + $0x18] sm:$0xff]  ;;  %v331_v12 = vld [vmem:[%s496_s2 + $0x10] sm:$0xff]  ;;  %v330_v13 = vld [vmem:[%s496_s2 + $0x8] sm:$0xff] }
   0x5   :  { %262 = vmatmul.msk.bf16.vlgmr.msra.gmra.mxu0 %vm40_vm0, %v28_v3  ;;  %v329_v14 = vld [vmem:[%s496_s2] sm:$0xff]  ;;  %v344_v18 = vld [vmem:[%s498_s3 + $0x38] sm:$0xff]  ;;  %v343_v20 = vld [vmem:[%s498_s3 + $0x30] sm:$0xff] }
   0x6   :  { %138 = vmatpush.bf16.msra.mxu1 %v335_v5  ;;  %v30_v15 = vld [vmem:[%s497_s4] sm:$0x3]  ;;  %230 = vmatpush.bf16.msrb.mxu0 %v344_v18  ;;  %v342_v23 = vld [vmem:[%s498_s3 + $0x28] sm:$0xff]  ;;  %v340_v35 = vld [vmem:[%s498_s3 + $0x18] sm:$0xff] }
   0x7   :  { %346 = vmatpush.bf16.msra.mxu3 %v335_v5  ;;  %v33_v17 = vperm.slane %v30_v15, 0  ;;  %353 = vmatpush.bf16.msra.mxu2 %v344_v18  ;;  %v341_v34 = vld [vmem:[%s498_s3 + $0x20] sm:$0xff]  ;;  %v339_v36 = vld [vmem:[%s498_s3 + $0x10] sm:$0xff]  ;;  %v338_v37 = vld [vmem:[%s498_s3 + $0x8] sm:$0xff]  ;;  %v88_v40 = vperm.slane %v30_v15, 1 }
   0x8   :  { %v337_v38 = vld [vmem:[%s498_s3] sm:$0xff] }
   0x9   :  { %v361_v54 = vld [vmem:[%s499_s5] ss:$0 sm:$0xff] }
   0xa   :  { %139 = vmatpush.bf16.msra.mxu1 %v334_v6  ;;  %231 = vmatpush.bf16.msrb.mxu0 %v343_v20 }
   0xb   :  { %347 = vmatpush.bf16.msra.mxu3 %v334_v6  ;;  %354 = vmatpush.bf16.msra.mxu2 %v343_v20 }
   0xe   :  { %140 = vmatpush.bf16.msra.mxu1 %v333_v10  ;;  %232 = vmatpush.bf16.msrb.mxu0 %v342_v23 }
   0xf   :  { %348 = vmatpush.bf16.msra.mxu3 %v333_v10  ;;  %355 = vmatpush.bf16.msra.mxu2 %v342_v23 }
  0x12   :  { %141 = vmatpush.bf16.msra.mxu1 %v332_v11  ;;  %233 = vmatpush.bf16.msrb.mxu0 %v341_v34 }
  0x13   :  { %349 = vmatpush.bf16.msra.mxu3 %v332_v11  ;;  %356 = vmatpush.bf16.msra.mxu2 %v341_v34 }
  0x15   :  { %263 = vmatmul.msk.bf16.gmra.mxu0 %vm40_vm0, %v29_v9 }
  0x16   :  { %142 = vmatpush.bf16.msra.mxu1 %v331_v12  ;;  %234 = vmatpush.bf16.msrb.mxu0 %v340_v35 }
  0x17   :  { %350 = vmatpush.bf16.msra.mxu3 %v331_v12  ;;  %357 = vmatpush.bf16.msra.mxu2 %v340_v35 }
  0x1a   :  { %143 = vmatpush.bf16.msra.mxu1 %v330_v13  ;;  %235 = vmatpush.bf16.msrb.mxu0 %v339_v36 }
  0x1b   :  { %351 = vmatpush.bf16.msra.mxu3 %v330_v13  ;;  %358 = vmatpush.bf16.msra.mxu2 %v339_v36 }
  0x1e   :  { %144 = vmatpush.bf16.msra.mxu1 %v329_v14  ;;  %236 = vmatpush.bf16.msrb.mxu0 %v338_v37 }
  0x1f   :  { %352 = vmatpush.bf16.msra.mxu3 %v329_v14  ;;  %359 = vmatpush.bf16.msra.mxu2 %v338_v37 }
  0x22   :  { %237 = vmatpush.bf16.msrb.mxu0 %v337_v38 }
  0x23   :  { %360 = vmatpush.bf16.msra.mxu2 %v337_v38 }
  0x82   :  { %v56_v16 = vpop.f32.mrf.mxu0 }
  0x83   :  { %v57_v19 = vadd.f32 %v56_v16, %v33_v17 }
  0x85   :  { %362 = vtanh.f32 %v57_v19 }
  0x8a   :  { %v58_v21 = vpop.f32.mrf.mxu0 }
  0x8b   :  { %v59_v22 = vadd.f32 %v58_v21, %v33_v17  ;;  %v363_v24 = vpop.eup %362 }
  0x8d   :  { %364 = vtanh.f32 %v59_v22 }
  0x92   :  { %v61_v25 = vpop.f32.mrf.mxu0 }
  0x93   :  { %v365_v26 = vpop.eup %364  ;;  %v62_v28 = vadd.f32 %v61_v25, %v33_v17 }
  0x94   :  { %v70_v27 = vpack.c.bf16 %v365_v26, %v363_v24 }
  0x95   :  { %366 = vtanh.f32 %v62_v28 }
  0x96   :  { %145 = vmatmul.bf16.vlgmr.msra.gmra.mxu1 %v70_v27 }
  0x9a   :  { %v63_v29 = vpop.f32.mrf.mxu0 }
  0x9b   :  { %v64_v30 = vadd.f32 %v63_v29, %v33_v17  ;;  %v367_v31 = vpop.eup %366 }
  0x9d   :  { %368 = vtanh.f32 %v64_v30 }
  0xa3   :  { %v369_v32 = vpop.eup %368 }
  0xa4   :  { %v71_v33 = vpack.c.bf16 %v369_v32, %v367_v31 }
  0xa6   :  { %150 = vmatmul.bf16.vlgmr.msra.gmra.mxu3 %v71_v33 }
 0x113   :  { %v146_v39 = vpop.f32.mrf.mxu1 }
 0x114   :  { %v147_v41 = vadd.f32 %v146_v39, %v88_v40 }
 0x116   :  { %370 = vtanh.f32 %v147_v41 }
 0x11b   :  { %v148_v42 = vpop.f32.mrf.mxu1 }
 0x11c   :  { %v149_v43 = vadd.f32 %v148_v42, %v88_v40  ;;  %v371_v44 = vpop.eup %370 }
 0x11e   :  { %372 = vtanh.f32 %v149_v43 }
 0x124   :  { %v373_v45 = vpop.eup %372 }
 0x125   :  { %v160_v46 = vpack.c.bf16 %v373_v45, %v371_v44 }
 0x127   :  { %238 = vmatmul.bf16.vlgmr.msrb.gmra.mxu0 %v160_v46 }
 0x129   :  { %v151_v47 = vpop.f32.mrf.mxu3 }
 0x12a   :  { %v152_v48 = vadd.f32 %v151_v47, %v88_v40 }
 0x12c   :  { %374 = vtanh.f32 %v152_v48 }
 0x131   :  { %v153_v49 = vpop.f32.mrf.mxu3 }
 0x132   :  { %v154_v50 = vadd.f32 %v153_v49, %v88_v40  ;;  %v375_v51 = vpop.eup %374 }
 0x134   :  { %376 = vtanh.f32 %v154_v50 }
 0x13a   :  { %v377_v52 = vpop.eup %376 }
 0x13b   :  { %v161_v53 = vpack.c.bf16 %v377_v52, %v375_v51 }
 0x13d   :  { %243 = vmatmul.bf16.vlgmr.msra.gmra.mxu2 %v161_v53 }
 0x1a4   :  { %v239_v55 = vpop.f32.mrf.mxu0 }
 0x1a5   :  { %v240_v56 = vadd.f32 %v361_v54, %v239_v55 }
 0x1a7   :  { %250 = vst.msk [vmem:[%s500_s6] sm:$0xff] %vm249_vm1, %v240_v56 }
 0x1ac   :  { %v241_v57 = vpop.f32.mrf.mxu0 }
 0x1ad   :  { %v242_v58 = vadd.f32 %v361_v54, %v241_v57 }
 0x1af   :  { %251 = vst.msk [vmem:[%s500_s6 + $0x8] sm:$0xff] %vm249_vm1, %v242_v58 }
 0x1c0   :  { %v244_v59 = vpop.f32.mrf.mxu2 }
 0x1c1   :  { %v245_v60 = vadd.f32 %v361_v54, %v244_v59 }
 0x1c3   :  { %252 = vst.msk [vmem:[%s500_s6 + $0x10] sm:$0xff] %vm249_vm1, %v245_v60 }
 0x1c8   :  { %v246_v61 = vpop.f32.mrf.mxu2 }
 0x1c9   :  { %v247_v62 = vadd.f32 %v361_v54, %v246_v61 }
 0x1cb   :  { %253 = vst.msk [vmem:[%s500_s6 + $0x18] sm:$0xff] %vm249_vm1, %v247_v62 }

</bundles_post_ra>
